<compile_context>
chip_gen: v6e
topology: v6e:2x2x1
jax: 0.10.0
libtpu: 0.0.40
codegen_flags: <defaults>
</compile_context>

<pallas_src>
import math

import jax
import jax.numpy as jnp
from jax import lax
from jax.experimental import pallas as pl
from jax.experimental.pallas import tpu as pltpu

_LANE = 128


def _round_up(x: int, m: int) -> int:
    return ((x + m - 1) // m) * m


def _sublane_multiple(dtype) -> int:
    # f32 -> 8, bf16 -> 16, int8/fp8 -> 32 (sub-32-bit dtypes pack sublanes).
    itemsize = jnp.dtype(dtype).itemsize
    return 8 * max(1, 4 // itemsize)


def _choose_row_split(B: int, N: int, sub: int) -> int:
    """R with (B*R) % sub == 0 and N % R == 0 (so the reshape is free), grown
    while the row axis is short and each sub-row keeps >= one lane group."""
    r0 = sub // math.gcd(B, sub)
    if N % r0 != 0:
        return 1  # no free split; fall back to full-dim row blocks
    R = r0
    while (B * R) < 128 and N % (2 * R) == 0 and (N // (2 * R)) >= _LANE:
        R *= 2
    return R


def _pick_tr(rows: int, align: int, cap: int = 64) -> int:
    """Largest divisor of rows that is a multiple of `align`, <= cap, and (if
    possible) <= rows//2 so the parallel grid axis has >= 2 blocks."""
    if rows % align != 0:
        return rows  # block row dim == full array dim (always legal)
    limit = min(cap, rows // 2) if rows >= 2 * align else min(cap, rows)
    best = None
    d = align
    while d <= limit:
        if rows % d == 0:
            best = d
        d += align
    return best if best is not None else rows


def _make_l2_kernel(TR: int, TN: int, M: int, nk: int):
    n_groups = TN // _LANE
    has_tail = (M % TN) != 0

    def _accumulate(a_ref, b_ref, masked: bool):
        acc = None
        for g in range(n_groups):
            lo = g * _LANE
            if masked:
                g_start = (nk - 1) * TN + lo  # static global column start
                if g_start >= M:
                    break  # fully past the valid range
            a = a_ref[:, lo:lo + _LANE].astype(jnp.float32)
            b = b_ref[:, lo:lo + _LANE].astype(jnp.float32)
            d = a - b
            d2 = d * d
            if masked and (g_start + _LANE > M):
                # Partially valid group: zero out the invalid lanes (select,
                # so OOB garbage — even NaN/Inf — cannot leak through).
                col = g_start + lax.broadcasted_iota(jnp.int32, (TR, _LANE), 1)
                d2 = jnp.where(col < M, d2, 0.0)
            acc = d2 if acc is None else acc + d2
        if acc is None:
            acc = jnp.zeros((TR, _LANE), jnp.float32)
        return acc

    def kernel(a_ref, b_ref, o_ref):
        k = pl.program_id(1)

        if nk > 1:
            @pl.when(k == 0)
            def _():
                o_ref[...] = jnp.zeros_like(o_ref)

        def _write(acc):
            if nk > 1:
                o_ref[...] += acc
            else:
                o_ref[...] = acc

        if not has_tail:
            _write(_accumulate(a_ref, b_ref, masked=False))
        else:
            if nk > 1:
                @pl.when(k < nk - 1)
                def _():
                    _write(_accumulate(a_ref, b_ref, masked=False))

            @pl.when(k == nk - 1)
            def _():
                _write(_accumulate(a_ref, b_ref, masked=True))

    return kernel


def l2_loss(in_1: jax.Array, in_2: jax.Array) -> jax.Array:
    """Per-sample mean squared error. Returns shape (B,) float32."""
    assert in_1.shape == in_2.shape
    B = in_1.shape[0]

    # flatten(start_dim=1) — free view.
    a = in_1.reshape(B, -1)
    b = in_2.reshape(B, -1)
    N = a.shape[1]

    dtype = a.dtype
    itemsize = jnp.dtype(dtype).itemsize
    sub = _sublane_multiple(dtype)

    # Sublane-filling sub-row split with NO padding copy (only if N % R == 0).
    R = _choose_row_split(B, N, sub)
    rows = B * R
    M = N // R
    a = a.reshape(rows, M)  # contiguous -> free reshape, no HBM traffic
    b = b.reshape(rows, M)

    # Row tile: small enough that the f32 accumulator stays register-resident,
    # chosen (when possible) so the parallel axis has >= 2 blocks (megacore).
    TR = _pick_tr(rows, sub, cap=64)

    # Column tile: ~4 MiB per input block (byte-based, dtype-aware), capped so
    # the static per-lane-group unroll stays <= 128 groups; always a multiple
    # of 128 lanes.
    block_bytes_target = 4 * 1024 * 1024
    tn_budget = max(_LANE, (block_bytes_target // (TR * itemsize)) // _LANE * _LANE)
    tn_unroll_cap = 128 * _LANE
    TN = max(_LANE, min(tn_budget, tn_unroll_cap, _round_up(M, _LANE)))

    nk = int(pl.cdiv(M, TN))
    grid = (rows // TR, nk)

    kernel = _make_l2_kernel(TR, TN, M, nk)

    # 2 inputs x 2 pipeline buffers x block + resident output + slack.
    block_bytes = TR * TN * itemsize
    vmem_limit = int(max(16 << 20, min(4 * block_bytes + 2 * TR * _LANE * 4 + (2 << 20),
                                       32 << 20)))

    cost = pl.CostEstimate(
        flops=3 * rows * M,  # sub + mul + add per element
        transcendentals=0,
        bytes_accessed=int(a.nbytes) + int(b.nbytes) + rows * _LANE * 4,
    )

    partial = pl.pallas_call(
        kernel,
        out_shape=jax.ShapeDtypeStruct((rows, _LANE), jnp.float32),
        grid_spec=pltpu.PrefetchScalarGridSpec(
            num_scalar_prefetch=0,
            grid=grid,
            in_specs=[
                pl.BlockSpec((TR, TN), lambda i, k: (i, k)),
                pl.BlockSpec((TR, TN), lambda i, k: (i, k)),
            ],
            out_specs=pl.BlockSpec((TR, _LANE), lambda i, k: (i, 0)),
        ),
        compiler_params=pltpu.CompilerParams(
            dimension_semantics=("parallel", "arbitrary"),
            vmem_limit_bytes=vmem_limit,
        ),
        cost_estimate=cost,
    )(a, b)

    # Tiny epilogue: cross-lane reduce, fold the R sub-rows per sample, apply
    # the mean with the TRUE element count N.
    per_row = jnp.sum(partial, axis=1)                        # (rows,)
    out = per_row.reshape(B, R).sum(axis=1) * (1.0 / float(N))
    return out.astype(jnp.float32)


if __name__ == "__main__":
    key = jax.random.PRNGKey(0)
    k1, k2 = jax.random.split(key)

    # Small shapes consistent with the forward: NCHW, batch=2, C=4, H=W=16.
    x = jax.random.normal(k1, (2, 4, 16, 16), dtype=jnp.float32)
    y = jax.random.normal(k2, (2, 4, 16, 16), dtype=jnp.float32)

    out = l2_loss(x, y)
    out = jax.block_until_ready(out)

    # Pure-JAX reference for correctness.
    ref = jnp.mean(((x - y) ** 2).reshape(x.shape[0], -1), axis=1)
    assert out.shape == (2,)
    assert jnp.allclose(out, ref, rtol=1e-5, atol=1e-5), (out, ref)

    print("KERNEL_OK")
</pallas_src>

<mosaic_0001>
module attributes {stable_mosaic.version = 11 : i64} {
  func.func @kernel(%arg0: i32, %arg1: i32, %arg2: memref<8x128xf32, #tpu.memory_space<vmem>>, %arg3: memref<8x128xf32, #tpu.memory_space<vmem>>, %arg4: memref<8x128xf32, #tpu.memory_space<vmem>>) attributes {dimension_semantics = [#tpu.dimension_semantics<parallel>, #tpu.dimension_semantics<arbitrary>], iteration_bounds = array<i64: 2, 1>, scalar_prefetch = 0 : i64, scratch_operands = 0 : i64, tpu.core_type = #tpu.core_type<tc>, window_params = [{transform_indices = @transform_0, window_bounds = array<i64: 8, 128>}, {transform_indices = @transform_1, window_bounds = array<i64: 8, 128>}, {transform_indices = @transform_2, window_bounds = array<i64: 8, 128>}]} {
    %c0 = arith.constant 0 : index
    %c0_0 = arith.constant 0 : index
    %0 = vector.load %arg2[%c0, %c0_0] : memref<8x128xf32, #tpu.memory_space<vmem>>, vector<8x128xf32>
    %c0_1 = arith.constant 0 : index
    %c0_2 = arith.constant 0 : index
    %1 = vector.load %arg3[%c0_1, %c0_2] : memref<8x128xf32, #tpu.memory_space<vmem>>, vector<8x128xf32>
    %2 = arith.subf %0, %1 : vector<8x128xf32>
    %3 = arith.mulf %2, %2 : vector<8x128xf32>
    %c0_3 = arith.constant 0 : index
    %c0_4 = arith.constant 0 : index
    %4 = vector.load %arg4[%c0_3, %c0_4] : memref<8x128xf32, #tpu.memory_space<vmem>>, vector<8x128xf32>
    tpu.vector_store %arg4[%c0_3, %c0_4], %3 {strides = array<i32>} : memref<8x128xf32, #tpu.memory_space<vmem>>, vector<8x128xf32>,
    return
  }
  func.func @transform_0(%arg0: i32, %arg1: i32) -> (i32, i32) {
    %c0_i32 = arith.constant 0 : i32
    return %arg0, %arg1 : i32, i32
  }
  func.func @transform_1(%arg0: i32, %arg1: i32) -> (i32, i32) {
    %c0_i32 = arith.constant 0 : i32
    return %arg0, %arg1 : i32, i32
  }
  func.func @transform_2(%arg0: i32, %arg1: i32) -> (i32, i32) {
    %c0_i32 = arith.constant 0 : i32
    %c0_i32_0 = arith.constant 0 : i32
    return %arg0, %c0_i32 : i32, i32
  }
}

</mosaic_0001>

<bundles_post_ra>
// kernel: tpu_custom_call.1
= control target key start
LH: loop header
LB: loop body
LE: loop exit
PB: predicated region body
PF: predicated region fallthrough
CT: control target
= control target key end

     0   :  { %7 = vsyncpa [#allocation3], 0  ;;  %s737_s0 = inlined_call_operand.hbm [shape: f32[16,128], index: 0, kind: input, shape index: {}]   ;;  %s738_s1 = inlined_call_operand.hbm [shape: f32[16,128], index: 1, kind: input, shape index: {}]   ;;  %s739_s2 = inlined_call_operand.hbm [shape: f32[16,128], index: 2, kind: output, shape index: {}]  }
   0x1   :  { %9 = vsyncpa [#allocation3 + $0x1], 0 }
   0x2   :  { %10 = vsyncpa [#allocation6], 0 }
   0x3   :  { %12 = vsyncpa [#allocation6 + $0x1], 0 }
   0x4   :  { %13 = vsyncpa [#allocation4], 0 }
   0x5   :  { %15 = vsyncpa [#allocation4 + $0x1], 0  ;;  %s576_s9 = smov 0   ;;  %s578_s10 = smov 0  }
   0x6   :  { %s580_s11 = smov 0   ;;  %s582_s12 = smov 0  }
   0x7   :  { %s584_s13 = smov 0   ;;  %s586_s14 = smov 0  }
   0x8 LB: > { %s333_s15 = sadd.s32 4294967295, %s556_s14   ;;  %s334_s16 = sadd.s32 4294967294, %s556_s14   ;;  %s556_s14 = sphi %s586_s14, %s21_s14   ;;  %s552_s13 = sphi %s584_s13, %s751_s13   ;;  %s548_s12 = sphi %s582_s12, %s750_s12   ;;  %s544_s11 = sphi %s580_s11, %s749_s11   ;;  %s540_s10 = sphi %s578_s10, %s748_s10   ;;  %s536_s9 = sphi %s576_s9, %s747_s9  }
   0x9   : > { %s33_s17 = sadd.s32 1, %s552_s13  ;;  %s42_s18 = sadd.s32 1, %s544_s11 }
   0xa   : > { %p35_p0 = scmp.ge.s32.totalorder %s33_s17, 2  ;;  %p49_p1 = scmp.ne.s32.totalorder %s544_s11, %s540_s10 }
   0xb   : > { %p50_p2 = scmp.eq.s32.totalorder %s556_s14, 0  ;;  %p55_p3 = scmp.ne.s32.totalorder %s540_s10, %s536_s9 }
   0xc   : > { %s753_s17 = smov (%p35_p0, %s33_s17), 0  ;;  %p56_p5 = scmp.eq.s32.totalorder %s333_s15, 0 }
   0xd   : > { %p617_p4 = por %p50_p2, %p49_p1  ;;  %s37_s20 = ssub.s32 %s552_s13, %s753_s17 }
   0xe   : > { %p107_p6 = scmp.eq.s32.totalorder %s333_s15, 1  ;;  %p40_p7 = scmp.eq.s32.totalorder %s37_s20, 0 }
   0xf   : > { %p623_p8 = por %p56_p5, %p55_p3  ;;  %p113_p10 = scmp.eq.s32.totalorder %s334_s16, 1 }
  0x10   : > { %p627_p9 = por %p107_p6, %p49_p1  ;;  %p366_p13 = scmp.lt.s32.totalorder %s556_s14, 2 }
  0x11   : > { %s632_s23 = scalar_select %p40_p7, %s544_s11, %s42_s18  }
  0x12   : > { %p634_p11 = por %p113_p10, %p55_p3  ;;  %s641_s25 = sand.u32 1, %s544_s11  }
  0x13   : > { %s337_s26 = sshll.u32 %s641_s25, 3  ;;  %s338_s27 = sshll.u32 %s552_s13, 7 }
  0x14   : > { %s143_s30 = scalar_lea.hbm %s737_s0, %s338_s27  ;;  %s137_s3 = scalar_lea.vmem [#allocation2], %s337_s26 }
  0x15   : > { %s145_s4 = sshll.u32 %s137_s3, 4  ;;  %p650_p0 = pnand %p366_p13, %p617_p4  ;;  %s146_s4 = int_to_ptr.vmem [resolvable:$true] %s145_s4 }
  0x16   : > { %p341_p1 = scmp.ge.s32.totalorder %s556_s14, 1  ;;  %p169_p2 = scmp.lt.s32.totalorder %s556_s14, 3 }
  0x17   : > { %s134_s6 = scalar_lea.sflag [#allocation3], %s641_s25  ;;  %p418_p3 = pneg %p650_p0 }
  0x18   : > { %s429_s7 = scalar_lea.vmem %s146_s4, 128  ;;  %s558_s8 = smov [#allocation2]  }
  0x19   : > { %p430_p5 = scmp.ne.s32.totalorder %s146_s4, %s429_s7  ;;  %s434_s15 = sshll.u32 %s558_s8, 4  ;;  %s435_s15 = int_to_ptr.vmem [resolvable:$false] %s434_s15 }
  0x1a   : > { %s436_s16 = scalar_lea.vmem %s435_s15, 256  ;;  %p437_p4 = scmp.lt.s32.totalorder %s146_s4, %s435_s15 }
  0x1b   : > { %p432_p6 = pnand %p430_p5, %p418_p3  ;;  %p438_p10 = scmp.lt.s32.totalorder %s436_s16, %s429_s7 }
  0x1d   : > { %p433_p7 = pneg %p432_p6  ;;  %p439_p13 = por %p438_p10, %p437_p4 }
  0x1f   : > { %p440_p12 = pnand %p439_p13, %p433_p7 }
  0x21   : > { %443 = shalt.err (!%p440_p12)
}
  0x22   : > { %358 = dma.hbm_to_vmem [thread:$0]  (!%p650_p0), %s143_s30, 128, %s146_s4, %s134_s6  }
  0x23   : > { %p668_p5 = pnand %p341_p1, %p169_p2  ;;  %s162_s28 = scalar_lea.hbm %s738_s1, %s338_s27 }
  0x24   : > { %s156_s29 = scalar_lea.vmem [#allocation5], %s337_s26  ;;  %s153_s7 = scalar_lea.sflag [#allocation6], %s641_s25 }
  0x25   : > { %s164_s3 = sshll.u32 %s156_s29, 4  ;;  %s559_s30 = smov [#allocation5]   ;;  %s165_s3 = int_to_ptr.vmem [resolvable:$true] %s164_s3 }
  0x26   : > { %s457_s8 = scalar_lea.vmem %s165_s3, 128  ;;  %s462_s4 = sshll.u32 %s559_s30, 4  ;;  %s463_s4 = int_to_ptr.vmem [resolvable:$false] %s462_s4 }
  0x27   : > { %p458_p12 = scmp.ne.s32.totalorder %s165_s3, %s457_s8  ;;  %s464_s6 = scalar_lea.vmem %s463_s4, 256 }
  0x28   : > { %p465_p1 = scmp.lt.s32.totalorder %s165_s3, %s463_s4  ;;  %p466_p2 = scmp.lt.s32.totalorder %s464_s6, %s457_s8 }
  0x29   : > { %p460_p6 = pnand %p458_p12, %p418_p3 }
  0x2a   : > { %p467_p4 = por %p466_p2, %p465_p1 }
  0x2b   : > { %p461_p7 = pneg %p460_p6 }
  0x2d   : > { %p468_p10 = pnand %p467_p4, %p461_p7 }
  0x2f   : > { %471 = shalt.err (!%p468_p10)
}
  0x30   : > { %361 = dma.hbm_to_vmem [thread:$0]  (!%p650_p0), %s162_s28, 128, %s165_s3, %s153_s7  }
  0x31   : > { %173 = sbr.rel (%p668_p5) target bundleno = 81 (0x51), region = 28  ;;  %s684_s25 = sand.u32 (!%p668_p5), 1, %s540_s10  }
  0x32   : > { %s342_s26 = sshll.u32 (!%p668_p5), %s684_s25, 3  ;;  %s176_s27 = scalar_lea.sflag (!%p668_p5), [#allocation3], %s684_s25 }
  0x33   : > { %s179_s15 = scalar_lea.vmem (!%p668_p5), [#allocation2], %s342_s26 }
  0x36   : > { %523 = dma.done.wait (%p623_p8), %s176_s27, 128  }
  0x37   : > { %525 = vsyncadd (%p623_p8), %s176_s27, 4294967168  ;;  %s185_s5 = scalar_lea.sflag [#allocation6], %s684_s25  ;;  %s188_s16 = scalar_lea.vmem [#allocation5], %s342_s26 }
  0x38   : > { %527 = dma.done.wait (%p623_p8), %s185_s5, 128  }
  0x39   : > { %529 = vsyncadd (%p623_p8), %s185_s5, 4294967168  ;;  %v214_v0 = vld [vmem:[%s179_s15] sm:$0xff]  ;;  %v215_v1 = vld [vmem:[%s188_s16] sm:$0xff]  ;;  %s213_s18 = scalar_lea.vmem [#allocation7], %s342_s26  ;;  %s346_s20 = sshll.u32 %s548_s12, 7 }
  0x3a   : > { %s233_s19 = sshll.u32 %s213_s18, 4  ;;  %v216_v2 = vsub.f32 %v214_v0, %v215_v1  ;;  %s231_s3 = scalar_lea.hbm %s739_s2, %s346_s20  ;;  %s234_s19 = int_to_ptr.vmem [resolvable:$true] %s233_s19 }
  0x3b   : > { %s220_s7 = scalar_lea.sflag [#allocation4], %s684_s25  ;;  %s472_s8 = scalar_lea.vmem %s234_s19, 128 }
  0x3c   : > { %v217_v3 = vmul.f32 %v216_v2, %v216_v2  ;;  %p473_p0 = scmp.ne.s32.totalorder %s234_s19, %s472_s8  ;;  %s560_s21 = smov [#allocation7]  }
  0x3d   : > { %s476_s30 = sshll.u32 %s560_s21, 4  ;;  %s477_s30 = int_to_ptr.vmem [resolvable:$false] %s476_s30 }
  0x3e   : > { %218 = vst [vmem:[%s213_s18] sm:$0xff] %v217_v3  ;;  %p474_p8 = pnand %p473_p0, %p627_p9  ;;  %s478_s4 = scalar_lea.vmem %s477_s30, 256 }
  0x3f   : > { %p479_p13 = scmp.lt.s32.totalorder %s234_s19, %s477_s30  ;;  %p480_p5 = scmp.lt.s32.totalorder %s478_s4, %s472_s8 }
  0x40   : > { %p475_p3 = pneg %p474_p8 }
  0x41   : > { %p481_p12 = por %p480_p5, %p479_p13 }
  0x43   : > { %p482_p6 = pnand %p481_p12, %p475_p3 }
  0x45   : > { %485 = shalt.err (!%p482_p6)
}
  0x46   : > { %s486_s12 = scalar_lea.hbm %s231_s3, 128  ;;  %s490_s26 = scalar_lea.hbm %s739_s2, 256 }
  0x47   : > { %p487_p7 = scmp.ne.s32.totalorder %s231_s3, %s486_s12  ;;  %p491_p4 = scmp.lt.s32.totalorder %s231_s3, %s739_s2 }
  0x48   : > { %p492_p10 = scmp.lt.s32.totalorder %s490_s26, %s486_s12 }
  0x49   : > { %p488_p1 = pnand %p487_p7, %p627_p9 }
  0x4a   : > { %p493_p0 = por %p492_p10, %p491_p4 }
  0x4b   : > { %p489_p2 = pneg %p488_p1 }
  0x4d   : > { %p494_p8 = pnand %p493_p0, %p489_p2 }
  0x4f   : > { %497 = shalt.err (!%p494_p8)
}
  0x50   : > { %353 = dma.vmem_to_hbm [thread:$0]  (%p627_p9), %s234_s19, 128, %s231_s3, %s220_s7  }
  0x51 PF: > { %s245_s5 = sand.u32 1, %s536_s9   ;;  %p746_p3 = scmp.ge.s32.totalorder %s556_s14, 2 }
  0x52   : > { %s246_s16 = scalar_lea.sflag [#allocation4], %s245_s5 }
  0x53   : > { %p363_p13 = pnand %p746_p3, %p634_p11 }
  0x55   : > { %p364_p5 = pneg %p363_p13 }
  0x57   : > { %531 = dma.done.wait (%p364_p5), %s246_s16, 128  }
  0x58   : > { %533 = vsyncadd (%p364_p5), %s246_s16, 4294967168  ;;  %s21_s14 = sadd.s32 1, %s556_s14   ;;  %s747_s9 = smov %s540_s10 }
  0x59   : > { %p18_p12 = scmp.ge.s32.totalorder %s21_s14, 4   ;;  %s748_s10 = smov %s544_s11 }
  0x5a   : > { %s749_s11 = smov %s632_s23  ;;  %s750_s12 = smov %s552_s13 }
  0x5b   : > { %s751_s13 = smov %s753_s17  ;;  %20 = sbr.rel (!%p18_p12) target bundleno = 8 (0x8), region = 86 }
  0x60   :  { %251 = vsyncpa [#allocation3], 1 }
  0x61   :  { %253 = vsyncpa [#allocation3 + $0x1], 1 }
  0x62   :  { %254 = vsyncpa [#allocation6], 1 }
  0x63   :  { %256 = vsyncpa [#allocation6 + $0x1], 1 }
  0x64   :  { %257 = vsyncpa [#allocation4], 1 }
  0x65   :  { %259 = vsyncpa [#allocation4 + $0x1], 1 }

</bundles_post_ra>
